<compile_context>
chip_gen: v7x
topology: tpu7x:2x2x1
jax: 0.10.0
libtpu: 0.0.40
codegen_flags: <defaults>
</compile_context>

<pallas_src>
import jax
import jax.numpy as jnp
from jax.experimental import pallas as pl
from jax.experimental.pallas import tpu as pltpu


def ffn_kernel(x_ref, w1_ref, b1_ref, w2_ref, b2_ref, o_ref):
    # x_ref : (G*Cin,  HW)        one block = G images, channels stacked on rows
    # w1_ref: (G*Cout, G*Cin)     block-diagonal kron(I_G, conv1.weight)
    # w2_ref: (G*Cout, G*Cout)    block-diagonal kron(I_G, conv2.weight)
    # b*_ref: (G*Cout, 1)         per-image-tiled biases (broadcast over lanes)
    # o_ref : (G*Cout, HW)
    x = x_ref[...].astype(jnp.float32)
    h = jnp.dot(w1_ref[...].astype(jnp.float32), x,
                preferred_element_type=jnp.float32) + b1_ref[...].astype(jnp.float32)
    h = jnp.maximum(h, 0.0)                                                 # ReLU
    y = jnp.dot(w2_ref[...].astype(jnp.float32), h,
                preferred_element_type=jnp.float32) + b2_ref[...].astype(jnp.float32)
    o_ref[...] = y.astype(o_ref.dtype)


def _pick_group(bl, cin, cout, hw, itemsize, max_block_bytes):
    """Images per block G.

    Valid G: divides B*L; for partial blocks the row counts (G*Cin, G*Cout)
    must be sublane-aligned (multiple of 8).  Preference order: fits the VMEM
    budget, yields >=2 grid blocks (megacore), largest G (amortize per-step
    overhead).  Falls back to the full array (single block) if needed.
    """
    lanes = -(-hw // 128) * 128
    min_blocks = 2 if bl >= 2 else 1
    best_score, best_g = None, bl
    for g in range(1, bl + 1):
        if bl % g:
            continue
        nb = bl // g
        if nb > 1 and ((g * cin) % 8 or (g * cout) % 8):
            continue
        rows_in = -(-(g * cin) // 8) * 8
        rows_out = -(-(g * cout) // 8) * 8
        # double-buffered x/out blocks + resident block-diagonal weights
        bytes_needed = (2 * (rows_in + rows_out) * lanes
                        + rows_out * rows_in + rows_out * rows_out) * itemsize
        score = (bytes_needed <= max_block_bytes, nb >= min_blocks, g)
        if best_score is None or score > best_score:
            best_score, best_g = score, g
    return best_g


def ffn_pallas(x, w1, b1, w2, b2, *, max_block_bytes=6 << 20):
    """x: (B, L, C, H, W); w1: (Cout, Cin); b1: (Cout,); w2: (Cout, Cout); b2: (Cout,).

    Weight orientation matches torch.nn.Conv2d(kernel_size=1): weight[:, :, 0, 0].
    The original torch module's final reshape requires Cout == Cin.
    """
    B, L, C, H, W = x.shape
    Cout, Cin = w1.shape
    assert Cin == C, "conv1 in_channels must match x channels"
    assert w2.shape == (Cout, Cout) and b1.shape == (Cout,) and b2.shape == (Cout,)

    BL, HW = B * L, H * W

    # Free, contiguous reshape: NCHW stays NCHW, no transpose / extra HBM pass.
    x2 = x.reshape(BL * C, HW)

    itemsize = jnp.dtype(x.dtype).itemsize
    G = _pick_group(BL, C, Cout, HW, itemsize, max_block_bytes)
    grid = (BL // G,)

    # Block-diagonal weights: one MXU matmul applies the conv to all G images.
    eye = jnp.eye(G, dtype=w1.dtype)
    w1_blk = jnp.kron(eye, w1)                     # (G*Cout, G*Cin)
    w2_blk = jnp.kron(eye.astype(w2.dtype), w2)    # (G*Cout, G*Cout)
    b1_blk = jnp.tile(b1, G).reshape(G * Cout, 1)  # (G*Cout, 1)
    b2_blk = jnp.tile(b2, G).reshape(G * Cout, 1)

    out2 = pl.pallas_call(
        ffn_kernel,
        out_shape=jax.ShapeDtypeStruct((BL * Cout, HW), x.dtype),
        grid_spec=pltpu.PrefetchScalarGridSpec(
            num_scalar_prefetch=0,
            grid=grid,
            in_specs=[
                pl.BlockSpec((G * C, HW), lambda i: (i, 0)),          # x block
                pl.BlockSpec((G * Cout, G * C), lambda i: (0, 0)),    # w1 (resident)
                pl.BlockSpec((G * Cout, 1), lambda i: (0, 0)),        # b1
                pl.BlockSpec((G * Cout, G * Cout), lambda i: (0, 0)), # w2 (resident)
                pl.BlockSpec((G * Cout, 1), lambda i: (0, 0)),        # b2
            ],
            out_specs=pl.BlockSpec((G * Cout, HW), lambda i: (i, 0)),
        ),
        compiler_params=pltpu.CompilerParams(
            dimension_semantics=("parallel",),
        ),
    )(x2, w1_blk, b1_blk, w2_blk, b2_blk)

    # Free reshape back (matches the torch module, which requires Cout == Cin).
    return out2.reshape(B, L, Cout, H, W)


def ffn_reference(x, w1, b1, w2, b2):
    # Pure-JAX reference of the PyTorch forward (1x1 convs == channel matmuls).
    B, L, C, H, W = x.shape
    xf = x.reshape(B * L, C, H * W)
    h = jnp.maximum(jnp.einsum("oc,nch->noh", w1, xf) + b1[None, :, None], 0.0)
    y = jnp.einsum("oc,nch->noh", w2, h) + b2[None, :, None]
    return y.reshape(B, L, -1, H, W)


if __name__ == "__main__":
    # Small shapes consistent with the module: x is (B, L, C, H, W)
    B, L, C, H, W = 2, 8, 4, 16, 16
    in_channels = out_channels = C

    key = jax.random.PRNGKey(0)
    kx, kw1, kb1, kw2, kb2 = jax.random.split(key, 5)

    x = jax.random.normal(kx, (B, L, C, H, W), dtype=jnp.float32)

    # Conv2d(kernel_size=1) params: weight (out, in, 1, 1) -> (out, in) matrix.
    # Kaiming-uniform-like bound = 1/sqrt(fan_in), fan_in = in_channels * 1 * 1.
    bound1 = 1.0 / (in_channels ** 0.5)
    bound2 = 1.0 / (out_channels ** 0.5)
    w1 = jax.random.uniform(kw1, (out_channels, in_channels), jnp.float32, -bound1, bound1)
    b1 = jax.random.uniform(kb1, (out_channels,), jnp.float32, -bound1, bound1)
    w2 = jax.random.uniform(kw2, (out_channels, out_channels), jnp.float32, -bound2, bound2)
    b2 = jax.random.uniform(kb2, (out_channels,), jnp.float32, -bound2, bound2)

    out = ffn_pallas(x, w1, b1, w2, b2)
    out = jax.block_until_ready(out)

    ref = ffn_reference(x, w1, b1, w2, b2)
    assert out.shape == (B, L, C, H, W)
    assert jnp.allclose(out, ref, atol=1e-5, rtol=1e-5), "mismatch vs reference"

    print("KERNEL_OK")
</pallas_src>

<mosaic_0001>
module attributes {stable_mosaic.version = 11 : i64} {
  func.func @ffn_kernel(%arg0: i32, %arg1: memref<32x256xf32, #tpu.memory_space<vmem>>, %arg2: memref<32x32xf32, #tpu.memory_space<vmem>>, %arg3: memref<32x1xf32, #tpu.memory_space<vmem>>, %arg4: memref<32x32xf32, #tpu.memory_space<vmem>>, %arg5: memref<32x1xf32, #tpu.memory_space<vmem>>, %arg6: memref<32x256xf32, #tpu.memory_space<vmem>>) attributes {dimension_semantics = [#tpu.dimension_semantics<parallel>], iteration_bounds = array<i64: 2>, scalar_prefetch = 0 : i64, scratch_operands = 0 : i64, tpu.core_type = #tpu.core_type<tc>, window_params = [{transform_indices = @transform_0, window_bounds = array<i64: 32, 256>}, {pipeline_mode = #tpu.pipeline_mode<synchronous>, transform_indices = @transform_1, window_bounds = array<i64: 32, 32>}, {pipeline_mode = #tpu.pipeline_mode<synchronous>, transform_indices = @transform_2, window_bounds = array<i64: 32, 1>}, {pipeline_mode = #tpu.pipeline_mode<synchronous>, transform_indices = @transform_3, window_bounds = array<i64: 32, 32>}, {pipeline_mode = #tpu.pipeline_mode<synchronous>, transform_indices = @transform_4, window_bounds = array<i64: 32, 1>}, {transform_indices = @transform_5, window_bounds = array<i64: 32, 256>}]} {
    %c0 = arith.constant 0 : index
    %c0_0 = arith.constant 0 : index
    %0 = vector.load %arg1[%c0, %c0_0] : memref<32x256xf32, #tpu.memory_space<vmem>>, vector<32x256xf32>
    %c0_1 = arith.constant 0 : index
    %c0_2 = arith.constant 0 : index
    %1 = vector.load %arg2[%c0_1, %c0_2] : memref<32x32xf32, #tpu.memory_space<vmem>>, vector<32x32xf32>
    %cst = arith.constant dense<0.000000e+00> : vector<32x256xf32>
    %2 = tpu.matmul %1, %0, %cst {dimension_numbers = #tpu.dot_dimension_numbers<[1], [0], [0], [1], [0, 0, 1, 1], [], []>} : vector<32x32xf32>, vector<32x256xf32>, vector<32x256xf32> -> vector<32x256xf32>
    %c0_3 = arith.constant 0 : index
    %c0_4 = arith.constant 0 : index
    %3 = vector.load %arg3[%c0_3, %c0_4] : memref<32x1xf32, #tpu.memory_space<vmem>>, vector<32x1xf32>
    %4 = vector.broadcast %3 : vector<32x1xf32> to vector<32x256xf32>
    %5 = arith.addf %2, %4 : vector<32x256xf32>
    %cst_5 = arith.constant 0.000000e+00 : f32
    %6 = vector.broadcast %cst_5 : f32 to vector<32x256xf32>
    %7 = arith.maximumf %5, %6 : vector<32x256xf32>
    %c0_6 = arith.constant 0 : index
    %c0_7 = arith.constant 0 : index
    %8 = vector.load %arg4[%c0_6, %c0_7] : memref<32x32xf32, #tpu.memory_space<vmem>>, vector<32x32xf32>
    %cst_8 = arith.constant dense<0.000000e+00> : vector<32x256xf32>
    %9 = tpu.matmul %8, %7, %cst_8 {dimension_numbers = #tpu.dot_dimension_numbers<[1], [0], [0], [1], [0, 0, 1, 1], [], []>} : vector<32x32xf32>, vector<32x256xf32>, vector<32x256xf32> -> vector<32x256xf32>
    %c0_9 = arith.constant 0 : index
    %c0_10 = arith.constant 0 : index
    %10 = vector.load %arg5[%c0_9, %c0_10] : memref<32x1xf32, #tpu.memory_space<vmem>>, vector<32x1xf32>
    %11 = vector.broadcast %10 : vector<32x1xf32> to vector<32x256xf32>
    %12 = arith.addf %9, %11 : vector<32x256xf32>
    %c0_11 = arith.constant 0 : index
    %c0_12 = arith.constant 0 : index
    %13 = vector.load %arg6[%c0_11, %c0_12] : memref<32x256xf32, #tpu.memory_space<vmem>>, vector<32x256xf32>
    tpu.vector_store %arg6[%c0_11, %c0_12], %12 {strides = array<i32>} : memref<32x256xf32, #tpu.memory_space<vmem>>, vector<32x256xf32>,
    return
  }
  func.func @transform_0(%arg0: i32) -> (i32, i32) {
    %c0_i32 = arith.constant 0 : i32
    %c0_i32_0 = arith.constant 0 : i32
    return %arg0, %c0_i32 : i32, i32
  }
  func.func @transform_1(%arg0: i32) -> (i32, i32) {
    %c0_i32 = arith.constant 0 : i32
    %c0_i32_0 = arith.constant 0 : i32
    %c0_i32_1 = arith.constant 0 : i32
    return %c0_i32, %c0_i32_0 : i32, i32
  }
  func.func @transform_2(%arg0: i32) -> (i32, i32) {
    %c0_i32 = arith.constant 0 : i32
    %c0_i32_0 = arith.constant 0 : i32
    %c0_i32_1 = arith.constant 0 : i32
    return %c0_i32, %c0_i32_0 : i32, i32
  }
  func.func @transform_3(%arg0: i32) -> (i32, i32) {
    %c0_i32 = arith.constant 0 : i32
    %c0_i32_0 = arith.constant 0 : i32
    %c0_i32_1 = arith.constant 0 : i32
    return %c0_i32, %c0_i32_0 : i32, i32
  }
  func.func @transform_4(%arg0: i32) -> (i32, i32) {
    %c0_i32 = arith.constant 0 : i32
    %c0_i32_0 = arith.constant 0 : i32
    %c0_i32_1 = arith.constant 0 : i32
    return %c0_i32, %c0_i32_0 : i32, i32
  }
  func.func @transform_5(%arg0: i32) -> (i32, i32) {
    %c0_i32 = arith.constant 0 : i32
    %c0_i32_0 = arith.constant 0 : i32
    return %arg0, %c0_i32 : i32, i32
  }
}

</mosaic_0001>

<bundles_post_ra>
// kernel: tpu_custom_call.1
= control target key start
LH: loop header
LB: loop body
LE: loop exit
PB: predicated region body
PF: predicated region fallthrough
CT: control target
= control target key end

     0   :  { %10 = vsyncpa [#allocation3], 0  ;;  %s1081_s0 = inlined_call_operand.hbm [shape: f32[64,256], index: 0, kind: input, shape index: {}]   ;;  %s1082_s1 = inlined_call_operand.vmem [shape: f32[32,32], index: 1, kind: input, shape index: {}]   ;;  %s1083_s2 = inlined_call_operand.vmem [shape: f32[32,1], index: 2, kind: input, shape index: {}]   ;;  %s1084_s3 = inlined_call_operand.vmem [shape: f32[32,32], index: 3, kind: input, shape index: {}]   ;;  %s1085_s4 = inlined_call_operand.vmem [shape: f32[32,1], index: 4, kind: input, shape index: {}]   ;;  %s1086_s5 = inlined_call_operand.hbm [shape: f32[64,256], index: 5, kind: output, shape index: {}]  }
   0x1   :  { %12 = vsyncpa [#allocation3 + $0x1], 0 }
   0x2   :  { %13 = vsyncpa [#allocation4], 0 }
   0x3   :  { %15 = vsyncpa [#allocation4 + $0x1], 0  ;;  %s851_s18 = smov 0   ;;  %s853_s19 = smov 0  }
   0x4   :  { %s855_s20 = smov 0   ;;  %s857_s21 = smov 0  }
   0x5 LB: > { %s872_s22 = sadd.s32 4294967295, %s811_s21   ;;  %s617_s23 = sadd.s32 4294967294, %s811_s21   ;;  %s811_s21 = sphi %s857_s21, %s1099_s21   ;;  %s807_s20 = sphi %s855_s20, %s1098_s20   ;;  %s803_s19 = sphi %s853_s19, %s1097_s19   ;;  %s799_s18 = sphi %s851_s18, %s1096_s18  }
   0x6   : > { %s876_s24 = sadd.s32 1, %s811_s21   ;;  %s28_s25 = sadd.s32 1, %s807_s20 }
   0x7   : > { %s25_s26 = ssub.s32 %s811_s21, %s876_s24  ;;  %p35_p0 = scmp.ne.s32.totalorder %s807_s20, %s803_s19 }
   0x8   : > { %p26_p1 = scmp.eq.s32.totalorder %s25_s26, 0  ;;  %p36_p2 = scmp.eq.s32.totalorder %s811_s21, 0 }
   0x9   : > { %p41_p3 = scmp.ne.s32.totalorder %s803_s19, %s799_s18  ;;  %p42_p4 = scmp.eq.s32.totalorder %s872_s22, 0 }
   0xa   : > { %s888_s27 = scalar_select %p26_p1, %s807_s20, %s28_s25  }
   0xb   : > { %p890_p5 = por %p36_p2, %p35_p0  ;;  %p894_p6 = por %p42_p4, %p41_p3 }
   0xc   : > { %p149_p7 = scmp.eq.s32.totalorder %s872_s22, 1  ;;  %p155_p8 = scmp.eq.s32.totalorder %s617_s23, 1 }
   0xd   : > { %p673_p10 = scmp.lt.s32.totalorder %s811_s21, 2  ;;  %s187_s7 = sand.u32 1, %s807_s20  }
   0xe   : > { %p901_p11 = por %p149_p7, %p35_p0  ;;  %p905_p12 = por %p155_p8, %p41_p3 }
   0xf   : > { %s642_s8 = sshll.u32 %s811_s21, 10  ;;  %s620_s9 = sshll.u32 %s187_s7, 6 }
  0x10   : > { %s1090_s30 = scalar_select %p901_p11, 1, 0 }
  0x11   : > { %s1091_s6 = scalar_select %p905_p12, 1, 0 }
  0x12   : > { %s914_s12 = scalar_lea.hbm %s1081_s0, %s642_s8  ;;  %s191_s13 = scalar_lea.vmem [#allocation2], %s620_s9 }
  0x13   : > { %s199_s14 = sshll.u32 %s191_s13, 4  ;;  %p918_p13 = pnand %p673_p10, %p890_p5  ;;  %s922_s14 = int_to_ptr.vmem [resolvable:$true] %s199_s14 }
  0x14   : > { %s924_s16 = scalar_lea.sflag [#allocation3], %s187_s7  ;;  %s715_s17 = scalar_lea.hbm %s914_s12, 1024 }
  0x15   : > { %p716_p0 = scmp.ne.s32.totalorder %s914_s12, %s715_s17  ;;  %p717_p1 = pneg %p918_p13 }
  0x16   : > { %s720_s26 = scalar_lea.hbm %s1081_s0, 2048  ;;  %p721_p4 = scmp.lt.u32.totalorder %s914_s12, %s1081_s0 }
  0x17   : > { %p718_p2 = pnand %p717_p1, %p716_p0  ;;  %p722_p5 = scmp.lt.u32.totalorder %s720_s26, %s715_s17 }
  0x18   : > { %p724_p8 = scmp.lt.u32.totalorder %s715_s17, %s914_s12 }
  0x19   : > { %p719_p3 = pneg %p718_p2  ;;  %p723_p7 = por %p722_p5, %p721_p4 }
  0x1b   : > { %p725_p10 = por %p724_p8, %p723_p7 }
  0x1d   : > { %p726_p9 = pnand %p725_p10, %p719_p3 }
  0x1f   : > { %729 = shalt.err (!%p726_p9)
}
  0x20   : > { %s730_s7 = scalar_lea.vmem %s922_s14, 1024  ;;  %s813_s9 = smov [#allocation2]  }
  0x21   : > { %p731_p0 = scmp.ne.s32.totalorder %s922_s14, %s730_s7  ;;  %s735_s10 = sshll.u32 %s813_s9, 4  ;;  %s736_s10 = int_to_ptr.vmem [resolvable:$false] %s735_s10 }
  0x22   : > { %s737_s11 = scalar_lea.vmem %s736_s10, 2048  ;;  %p738_p11 = scmp.lt.s32.totalorder %s922_s14, %s736_s10 }
  0x23   : > { %p733_p2 = pnand %p731_p0, %p717_p1  ;;  %p739_p4 = scmp.lt.s32.totalorder %s737_s11, %s730_s7 }
  0x25   : > { %p734_p12 = pneg %p733_p2  ;;  %p740_p5 = por %p739_p4, %p738_p11 }
  0x27   : > { %p741_p7 = pnand %p740_p5, %p734_p12 }
  0x29   : > { %744 = shalt.err (!%p741_p7)
}
  0x2a   : > { %s814_s13 = smov 256   ;;  %s815_s17 = smov 16  }
  0x2b   : > { %668 = dma.hbm_to_vmem [thread:$0]  (!%p918_p13), %s914_s12, 1024, %s922_s14, %s924_s16, %s814_s13, %s814_s13, %s815_s17  }
  0x2c   : > { %p624_p9 = scmp.ge.s32.totalorder %s811_s21, 1  ;;  %p207_p1 = scmp.lt.s32.totalorder %s811_s21, 3 }
  0x2e   : > { %p208_p3 = pnand %p624_p9, %p207_p1 }
  0x2f   : > { %s955_s23 = sand.u32 (!%p208_p3), 1, %s803_s19  }
  0x30   : > { %211 = sbr.rel (%p208_p3) target bundleno = 544 (0x220), region = 40  ;;  %s625_s25 = sshll.u32 (!%p208_p3), %s955_s23, 6 }
  0x31   : > { %s214_s26 = scalar_lea.sflag (!%p208_p3), [#allocation3], %s955_s23  ;;  %s217_s28 = scalar_lea.vmem (!%p208_p3), [#allocation2], %s625_s25 }
  0x37   : > { %790 = dma.done.wait (%p894_p6), %s214_s26, 1024  }
  0x38   : > { %792 = vsyncadd (%p894_p6), %s214_s26, 4294966272  ;;  %v816_v0 = vmov 0.0   ;;  %v817_v1 = vmov 0   ;;  %v247_v2 = vld [vmem:[%s217_s28 + $0x8] sm:$0xff]  ;;  %v249_v3 = vld [vmem:[%s217_s28 + $0x18] sm:$0xff]  ;;  %vm282_vm0 = vcmask 261120  }
  0x39   : > { %359 = vmatprep.mubr.f32.mxu0 %v816_v0  ;;  %713 = vset.pattern.permute.xlu0 %v817_v1  ;;  %v246_v4 = vld [vmem:[%s217_s28] sm:$0xff]  ;;  %v645_v5 = vpack.c.bf16 %v249_v3, %v247_v2  ;;  %v248_v6 = vld [vmem:[%s217_s28 + $0x10] sm:$0xff]  ;;  %v251_v7 = vld [vmem:[%s217_s28 + $0x28] sm:$0xff]  ;;  %s243_s16 = scalar_lea.vmem [#allocation5], %s625_s25  ;;  %s644_s7 = sshll.u32 %s872_s22, 10 }
  0x3a   : > { %714 = vset.pattern.permute.xlu1 %v817_v1  ;;  %496 = vmatprep.mubr.f32.mxu1 %v816_v0  ;;  %v253_v8 = vld [vmem:[%s217_s28 + $0x38] sm:$0xff]  ;;  %v647_v9 = vpack.c.bf16 %v248_v6, %v246_v4  ;;  %v250_v11 = vld [vmem:[%s217_s28 + $0x20] sm:$0xff]  ;;  %v252_v12 = vld [vmem:[%s217_s28 + $0x30] sm:$0xff]  ;;  %s544_s8 = sshll.u32 %s243_s16, 4  ;;  %s1037_s10 = scalar_lea.hbm %s1086_s5, %s644_s7  ;;  %s1032_s8 = int_to_ptr.vmem [resolvable:$true] %s544_s8 }
  0x3b   : > { %v649_v10 = vpack.c.bf16 %v253_v8, %v251_v7  ;;  %646 = vmatprep.subr.bf16.mxu0 %v645_v5  ;;  %v651_v13 = vpack.c.bf16 %v252_v12, %v250_v11  ;;  %v258_v14 = vld [vmem:[%s1083_s2] sm:$0xff]  ;;  %v260_v15 = vld [vmem:[%s1083_s2 + $0x10] sm:$0xff]  ;;  %v259_v16 = vld [vmem:[%s1083_s2 + $0x8] sm:$0xff]  ;;  %s530_s22 = scalar_lea.sflag [#allocation4], %s955_s23  ;;  %s745_s11 = scalar_lea.vmem %s1032_s8, 1024 }
  0x3c   : > { %648 = vmatpush1.bf16.msra.mxu0 %v647_v9  ;;  %264 = vperm.xlu0 %713, %v258_v14   ;;  %v261_v17 = vld [vmem:[%s1083_s2 + $0x18] sm:$0xff]  ;;  %v254_v18 = vld [vmem:[%s1082_s1] sm:$0xff]  ;;  %v397_v20 = vld [vmem:[%s1085_s4 + $0x8] sm:$0xff]  ;;  %p746_p6 = scmp.ne.s32.totalorder %s1032_s8, %s745_s11  ;;  %p1093_p11 = scmp.ne.s32.totalorder %s1090_s30, 0 }
  0x3d   : > { %650 = vmatprep.subr.bf16.mxu0 %v649_v10  ;;  %274 = vperm.xlu1 %714, %v260_v15   ;;  %v396_v19 = vld [vmem:[%s1085_s4] sm:$0xff]  ;;  %v255_v21 = vld [vmem:[%s1082_s1 + $0x8] sm:$0xff]  ;;  %v398_v22 = vld [vmem:[%s1085_s4 + $0x10] sm:$0xff]  ;;  %s818_s13 = smov [#allocation5]  }
  0x3e   : > { %v399_v23 = vld [vmem:[%s1085_s4 + $0x18] sm:$0xff]  ;;  %v256_v24 = vld [vmem:[%s1082_s1 + $0x10] sm:$0xff]  ;;  %v392_v58 = vld [vmem:[%s1084_s3] sm:$0xff]  ;;  %p747_p12 = pnand %p746_p6, %p1093_p11  ;;  %s749_s17 = sshll.u32 %s818_s13, 4  ;;  %s750_s17 = int_to_ptr.vmem [resolvable:$false] %s749_s17 }
  0x3f   : > { %v257_v25 = vld [vmem:[%s1082_s1 + $0x18] sm:$0xff]  ;;  %v393_v59 = vld [vmem:[%s1084_s3 + $0x8] sm:$0xff]  ;;  %v394_v60 = vld [vmem:[%s1084_s3 + $0x10] sm:$0xff]  ;;  %s751_s26 = scalar_lea.vmem %s750_s17, 2048  ;;  %p752_p8 = scmp.lt.s32.totalorder %s1032_s8, %s750_s17 }
  0x40   : > { %652 = vmatpush1.bf16.msra.mxu0 %v651_v13  ;;  %269 = vperm.xlu0 %713, %v259_v16   ;;  %v395_v61 = vld [vmem:[%s1084_s3 + $0x18] sm:$0xff]  ;;  %p748_p13 = pneg %p747_p12  ;;  %p753_p10 = scmp.lt.s32.totalorder %s751_s26, %s745_s11 }
  0x41   : > { %279 = vperm.xlu1 %714, %v261_v17  }
  0x42   : > { %p754_p0 = por %p753_p10, %p752_p8 }
  0x43   : > { %627 = vmatmul.mubr.msk.f32.vlgmr.msra.gmra.mrb[0].mxu0 %vm282_vm0, %v254_v18 }
  0x44   : > { %365 = vmatprep.mubr.f32.mxu0 %v816_v0  ;;  %402 = vperm.xlu0 %713, %v396_v19   ;;  %p755_p2 = pnand %p754_p0, %p748_p13 }
  0x45   : > { %407 = vperm.xlu1 %714, %v397_v20  }
  0x47   : > { %628 = vmatmul.mubr.msk.f32.gmra.mrb[2].mxu0 %vm282_vm0, %v255_v21 }
  0x48   : > { %371 = vmatprep.mubr.f32.mxu0 %v816_v0  ;;  %412 = vperm.xlu0 %713, %v398_v22  }
  0x49   : > { %417 = vperm.xlu1 %714, %v399_v23  }
  0x4b   : > { %629 = vmatmul.mubr.msk.f32.gmra.mrb[4].mxu0 %vm282_vm0, %v256_v24 }
  0x4c   : > { %377 = vmatprep.mubr.f32.mxu0 %v816_v0 }
  0x4f   : > { %630 = vmatmul.mubr.msk.f32.gmra.mrb[6].mxu0 %vm282_vm0, %v257_v25 }
  0xbb   : > { %v265_v26 = vpop.permute.xlu0 %264 }
  0xbc   : > { %v275_v35 = vpop.permute.xlu1 %274 }
  0xbf   : > { %v270_v30 = vpop.permute.xlu0 %269 }
  0xc0   : > { %v280_v46 = vpop.permute.xlu1 %279 }
  0xc3   : > { %v403_v62 = vpop.permute.xlu0 %402 }
  0xc4   : > { %v408_v4 = vpop.permute.xlu1 %407 }
  0xc7   : > { %v413_v8 = vpop.permute.xlu0 %412 }
  0xc8   : > { %v418_v13 = vpop.permute.xlu1 %417 }
 0x116   : > { %v361_v27 = vpop.f32.mrb[0].mxu0 }
 0x117   : > { %v363_v28 = vpop.f32.mrb[1].mxu0  ;;  %v362_v29 = vadd.f32 %v361_v27, %v265_v26 }
 0x118   : > { %v364_v31 = vadd.f32 %v363_v28, %v265_v26 }
 0x119   : > { %v384_v37 = vmax.f32 %v362_v29, 0.0 }
 0x11a   : > { %v367_v32 = vpop.f32.mrb[2].mxu0  ;;  %v385_v39 = vmax.f32 %v364_v31, 0.0 }
 0x11b   : > { %v368_v33 = vadd.f32 %v367_v32, %v270_v30  ;;  %v369_v34 = vpop.f32.mrb[3].mxu0 }
 0x11c   : > { %v370_v36 = vadd.f32 %v369_v34, %v270_v30 }
 0x11d   : > { %v386_v38 = vmax.f32 %v368_v33, 0.0 }
 0x11e   : > { %v387_v40 = vmax.f32 %v370_v36, 0.0  ;;  %v373_v41 = vpop.f32.mrb[4].mxu0 }
 0x11f   : > { %v375_v42 = vpop.f32.mrb[5].mxu0  ;;  %v655_v43 = vpack.c.bf16 %v386_v38, %v384_v37  ;;  %v374_v45 = vadd.f32 %v373_v41, %v275_v35 }
 0x120   : > { %v653_v44 = vpack.c.bf16 %v387_v40, %v385_v39  ;;  %v376_v47 = vadd.f32 %v375_v42, %v275_v35 }
 0x121   : > { %v388_v52 = vmax.f32 %v374_v45, 0.0 }
 0x122   : > { %v379_v48 = vpop.f32.mrb[6].mxu0  ;;  %654 = vmatprep.subr.bf16.mxu1 %v653_v44  ;;  %v389_v54 = vmax.f32 %v376_v47, 0.0 }
 0x123   : > { %v380_v49 = vadd.f32 %v379_v48, %v280_v46  ;;  %v381_v50 = vpop.f32.mrb[7].mxu0  ;;  %656 = vmatpush1.bf16.msra.mxu1 %v655_v43 }
 0x124   : > { %v382_v51 = vadd.f32 %v381_v50, %v280_v46 }
 0x125   : > { %v390_v53 = vmax.f32 %v380_v49, 0.0 }
 0x126   : > { %v391_v55 = vmax.f32 %v382_v51, 0.0 }
 0x127   : > { %v659_v56 = vpack.c.bf16 %v390_v53, %v388_v52 }
 0x128   : > { %v657_v57 = vpack.c.bf16 %v391_v55, %v389_v54 }
 0x12a   : > { %658 = vmatprep.subr.bf16.mxu1 %v657_v57 }
 0x12b   : > { %660 = vmatpush1.bf16.msra.mxu1 %v659_v56 }
 0x12e   : > { %631 = vmatmul.mubr.msk.f32.vlgmr.msra.gmra.mrb[0].mxu1 %vm282_vm0, %v392_v58 }
 0x12f   : > { %502 = vmatprep.mubr.f32.mxu1 %v816_v0 }
 0x132   : > { %632 = vmatmul.mubr.msk.f32.gmra.mrb[2].mxu1 %vm282_vm0, %v393_v59 }
 0x133   : > { %508 = vmatprep.mubr.f32.mxu1 %v816_v0 }
 0x136   : > { %633 = vmatmul.mubr.msk.f32.gmra.mrb[4].mxu1 %vm282_vm0, %v394_v60 }
 0x137   : > { %514 = vmatprep.mubr.f32.mxu1 %v816_v0 }
 0x13a   : > { %634 = vmatmul.mubr.msk.f32.gmra.mrb[6].mxu1 %vm282_vm0, %v395_v61 }
 0x201   : > { %v498_v63 = vpop.f32.mrb[0].mxu1 }
 0x202   : > { %v499_v1 = vadd.f32 %v498_v63, %v403_v62  ;;  %v500_v2 = vpop.f32.mrb[1].mxu1 }
 0x203   : > { %v501_v3 = vadd.f32 %v500_v2, %v403_v62 }
 0x204   : > { %521 = vst [vmem:[%s243_s16] sm:$0xff] %v499_v1 }
 0x205   : > { %522 = vst [vmem:[%s243_s16 + $0x8] sm:$0xff] %v501_v3  ;;  %v504_v5 = vpop.f32.mrb[2].mxu1 }
 0x206   : > { %v505_v6 = vadd.f32 %v504_v5, %v408_v4  ;;  %v506_v0 = vpop.f32.mrb[3].mxu1 }
 0x207   : > { %v507_v7 = vadd.f32 %v506_v0, %v408_v4 }
 0x208   : > { %523 = vst [vmem:[%s243_s16 + $0x10] sm:$0xff] %v505_v6 }
 0x209   : > { %524 = vst [vmem:[%s243_s16 + $0x18] sm:$0xff] %v507_v7  ;;  %v510_v9 = vpop.f32.mrb[4].mxu1 }
 0x20a   : > { %v511_v10 = vadd.f32 %v510_v9, %v413_v8  ;;  %v512_v11 = vpop.f32.mrb[5].mxu1 }
 0x20b   : > { %v513_v12 = vadd.f32 %v512_v11, %v413_v8 }
 0x20c   : > { %525 = vst [vmem:[%s243_s16 + $0x20] sm:$0xff] %v511_v10 }
 0x20d   : > { %526 = vst [vmem:[%s243_s16 + $0x28] sm:$0xff] %v513_v12  ;;  %v516_v14 = vpop.f32.mrb[6].mxu1 }
 0x20e   : > { %v517_v15 = vadd.f32 %v516_v14, %v418_v13  ;;  %v518_v16 = vpop.f32.mrb[7].mxu1 }
 0x20f   : > { %v519_v17 = vadd.f32 %v518_v16, %v418_v13 }
 0x210   : > { %527 = vst [vmem:[%s243_s16 + $0x30] sm:$0xff] %v517_v15 }
 0x211   : > { %528 = vst [vmem:[%s243_s16 + $0x38] sm:$0xff] %v519_v17 }
 0x212   : > { %758 = shalt.err (!%p755_p2)
}
 0x213   : > { %s759_s28 = scalar_lea.hbm %s1037_s10, 1024  ;;  %s763_s14 = scalar_lea.hbm %s1086_s5, 2048 }
 0x214   : > { %p760_p4 = scmp.ne.s32.totalorder %s1037_s10, %s759_s28  ;;  %p764_p9 = scmp.lt.u32.totalorder %s1037_s10, %s1086_s5 }
 0x215   : > { %p765_p1 = scmp.lt.u32.totalorder %s763_s14, %s759_s28  ;;  %p767_p6 = scmp.lt.u32.totalorder %s759_s28, %s1037_s10 }
 0x216   : > { %p761_p5 = pnand %p760_p4, %p1093_p11 }
 0x217   : > { %p766_p3 = por %p765_p1, %p764_p9 }
 0x218   : > { %p762_p7 = pneg %p761_p5 }
 0x219   : > { %p768_p12 = por %p767_p6, %p766_p3 }
 0x21b   : > { %p769_p13 = pnand %p768_p12, %p762_p7 }
 0x21d   : > { %772 = shalt.err (!%p769_p13)
}
 0x21e   : > { %s819_s7 = smov 256   ;;  %s820_s25 = smov 16  }
 0x21f   : > { %663 = dma.vmem_to_hbm [thread:$0]  (%p1093_p11), %s1032_s8, 1024, %s1037_s10, %s530_s22, %s819_s7, %s819_s7, %s820_s25  }
 0x220 PF: > { %s559_s9 = sand.u32 1, %s799_s18   ;;  %p1094_p8 = scmp.ne.s32.totalorder %s1091_s6, 0 }
 0x221   : > { %p1095_p10 = scmp.ge.s32.totalorder %s811_s21, 2  ;;  %s560_s11 = scalar_lea.sflag [#allocation4], %s559_s9 }
 0x223   : > { %p670_p0 = pnand %p1095_p10, %p1094_p8 }
 0x225   : > { %794 = dma.done.wait (!%p670_p0), %s560_s11, 1024  }
 0x226   : > { %796 = vsyncadd (!%p670_p0), %s560_s11, 4294966272  ;;  %p18_p2 = scmp.ge.s32.totalorder %s876_s24, 4   ;;  %s1096_s18 = smov %s803_s19 }
 0x227   : > { %s1097_s19 = smov %s807_s20  ;;  %s1098_s20 = smov %s888_s27 }
 0x228   : > { %s1099_s21 = smov %s876_s24  ;;  %20 = sbr.rel (!%p18_p2) target bundleno = 5 (0x5), region = 85 }
 0x22f   :  { %565 = vsyncpa [#allocation3], 1 }
 0x230   :  { %567 = vsyncpa [#allocation3 + $0x1], 1 }
 0x231   :  { %568 = vsyncpa [#allocation4], 1 }
 0x232   :  { %570 = vsyncpa [#allocation4 + $0x1], 1 }

</bundles_post_ra>
